<compile_context>
chip_gen: v7x
topology: tpu7x:2x2x1
jax: 0.10.0
libtpu: 0.0.40
codegen_flags: <defaults>
</compile_context>

<pallas_src>
import math
import functools

import jax
import jax.numpy as jnp
from jax import lax
from jax.experimental import pallas as pl
from jax.experimental.pallas import tpu as pltpu


def _round_up(x, m):
    return (x + m - 1) // m * m


# VMEM budgeting, conservative across v5e / v6e / v7x (v7x: 64 MiB physical VMEM).
_VMEM_LIMIT_BYTES = 48 * 1024 * 1024   # scoped-VMEM cap handed to Mosaic
_WORKSET_BUDGET = 32 * 1024 * 1024     # our estimate of the pipelined working set
_WEIGHT_BUDGET = 20 * 1024 * 1024      # double-buffered resident weight-panel cap


# ----------------------------------------------------------------------------
# Pallas kernels: single bf16 MXU dot + fused f32 affine (+ residual) + ReLU
# ----------------------------------------------------------------------------
def _mm_kernel(x_ref, w_ref, s_ref, b_ref, o_ref, *, relu):
    acc = jnp.dot(x_ref[...], w_ref[...], preferred_element_type=jnp.float32)
    y = acc * s_ref[...] + b_ref[...]
    if relu:
        y = jnp.maximum(y, 0.0)
    o_ref[...] = y.astype(o_ref.dtype)


def _mm_res_kernel(x_ref, w_ref, s_ref, b_ref, r_ref, o_ref, *, relu):
    acc = jnp.dot(x_ref[...], w_ref[...], preferred_element_type=jnp.float32)
    y = acc * s_ref[...] + b_ref[...] + r_ref[...].astype(jnp.float32)
    if relu:
        y = jnp.maximum(y, 0.0)
    o_ref[...] = y.astype(o_ref.dtype)


# ----------------------------------------------------------------------------
# Tile selection against an explicit VMEM budget
# ----------------------------------------------------------------------------
def _pick_tiles(M, K, Np, has_res):
    # Column (N) panel: whole weight resident when it fits; otherwise the largest
    # 128-multiple divisor of Np whose double-buffered bf16 panel stays in budget.
    tn = Np
    if 2 * K * Np * 2 > _WEIGHT_BUDGET:
        tn = 128
        for d in range(Np // 128, 0, -1):
            cand = d * 128
            if Np % cand == 0 and 2 * K * cand * 2 <= _WEIGHT_BUDGET:
                tn = cand
                break

    fixed = 2 * (K * tn * 2) + 4 * (tn * 4)          # dbl-buffered weight + scale/bias
    per_row = (2 * (K * 2)                            # x tile, double-buffered
               + (4 if has_res else 2) * (tn * 2)     # out (+ residual), double-buffered
               + 2 * (tn * 4))                        # f32 dot result / epilogue temps

    def fits(c):
        return fixed + c * per_row <= _WORKSET_BUDGET

    m16 = _round_up(M, 16)
    cands = [c for c in (1024, 512, 256, 128, 64, 32, 16) if c <= m16]
    if m16 <= 1024 and m16 not in cands:
        cands = sorted(set(cands + [m16]), reverse=True)
    if not cands:
        cands = [16]

    tm = None
    for need_two in (True, False):       # prefer >=2 M blocks (feeds both v7x TCs)
        for c in cands:
            if not fits(c):
                continue
            mp = _round_up(M, c)
            if (mp - M) * 8 > max(M, 128):   # cap M-padding waste at ~12.5%
                continue
            if need_two and mp // c < 2:
                continue
            tm = c
            break
        if tm is not None:
            break
    if tm is None:
        tm = 16
    return tm, tn


# ----------------------------------------------------------------------------
# Pallas wrapper
# ----------------------------------------------------------------------------
def matmul_fused(x, prep, *, relu=False, residual=None, out_dtype=jnp.bfloat16):
    """y = maybe_relu((x @ w) * scale + bias [+ residual]).

    x: (M, K).  prep['w']: (K, Np) bf16 (N padded to 128, K unpadded);
    prep['s'] / prep['b']: (1, Np) f32.  residual (optional): (M, N), fused epilogue add.
    No K-reduction grid axis: the weight / scale / bias panels are VMEM-resident
    (their block index is constant over the inner M sweep), so per-step HBM traffic
    is only the x tile in and the output tile out.
    """
    M, K = x.shape
    w, s, b, N = prep['w'], prep['s'], prep['b'], prep['n']
    assert w.shape[0] == K, (w.shape, K)
    Np = w.shape[1]

    has_res = residual is not None
    tm, tn = _pick_tiles(M, K, Np, has_res)
    Mp = _round_up(M, tm)
    gi, gj = Mp // tm, Np // tn

    xp = x.astype(jnp.bfloat16)
    if Mp != M:
        xp = jnp.pad(xp, ((0, Mp - M), (0, 0)))

    inputs = [xp, w, s, b]
    # grid = (j, i): weight / scale / bias are constant over the inner i sweep, so
    # each weight panel is DMA'd exactly once and stays VMEM-resident.
    in_specs = [
        pl.BlockSpec((tm, K), lambda j, i: (i, 0)),
        pl.BlockSpec((K, tn), lambda j, i: (0, j)),
        pl.BlockSpec((1, tn), lambda j, i: (0, j)),
        pl.BlockSpec((1, tn), lambda j, i: (0, j)),
    ]
    if has_res:
        rp = residual.astype(jnp.bfloat16)
        if rp.shape != (Mp, Np):
            rp = jnp.pad(rp, ((0, Mp - M), (0, Np - residual.shape[1])))
        inputs.append(rp)
        in_specs.append(pl.BlockSpec((tm, tn), lambda j, i: (i, j)))
        kernel = functools.partial(_mm_res_kernel, relu=relu)
    else:
        kernel = functools.partial(_mm_kernel, relu=relu)

    bytes_accessed = (Mp * K + K * Np + (2 if has_res else 1) * Mp * Np) * 2 + Np * 8
    cost = pl.CostEstimate(flops=2 * Mp * K * Np, transcendentals=0,
                           bytes_accessed=int(bytes_accessed))

    # TODO(synk): consider pipeline_mode=pl.Buffered(3) on the x input once the weight
    # is resident (deeper DMA hiding); left at default double-buffering for portability.
    out = pl.pallas_call(
        kernel,
        out_shape=jax.ShapeDtypeStruct((Mp, Np), out_dtype),
        grid=(gj, gi),
        in_specs=in_specs,
        out_specs=pl.BlockSpec((tm, tn), lambda j, i: (i, j)),
        compiler_params=pltpu.CompilerParams(
            dimension_semantics=("parallel", "parallel"),
            vmem_limit_bytes=_VMEM_LIMIT_BYTES),
        cost_estimate=cost,
    )(*inputs)

    if (Mp, Np) == (M, N):
        return out            # already aligned: skip the de-padding slice
    return out[:M, :N]


# ----------------------------------------------------------------------------
# Model building blocks (glue around the Pallas kernel)
# ----------------------------------------------------------------------------
def conv_bn_act(x, cp, relu=True, residual=None, out_dtype=jnp.bfloat16):
    """Conv2d(bias=False) + folded BatchNorm affine + optional residual + ReLU."""
    B, H, W, Cin = x.shape
    KH, KW = cp['ksize']
    stride, pad = cp['stride'], cp['pad']
    if KH == 1 and KW == 1 and stride == 1 and pad == 0:
        patches = x.reshape(B * H * W, Cin)
        oh, ow = H, W
    else:
        # XLA patch gather in bf16; output feature ordering is (cin, kh, kw), matching
        # the prepared weight layout (verified in _check_patch_conv_ordering).
        # TODO(synk): fold the KH*KW tap reduction into the Pallas grid (shifted-slab
        # index_map / manual DMA) so the 9x bf16 patch tensor never hits HBM.
        patches = lax.conv_general_dilated_patches(
            x, filter_shape=(KH, KW), window_strides=(stride, stride),
            padding=((pad, pad), (pad, pad)),
            dimension_numbers=("NHWC", "HWIO", "NHWC"))
        oh, ow = patches.shape[1], patches.shape[2]
        patches = patches.reshape(B * oh * ow, KH * KW * Cin)
    res2d = None if residual is None else residual.reshape(B * oh * ow, -1)
    out = matmul_fused(patches, cp, relu=relu, residual=res2d, out_dtype=out_dtype)
    return out.reshape(B, oh, ow, cp['n'])


def avg_pool(x, k):
    # f32-accumulated mean, bf16 result; no full-size f32 tensor is materialized.
    # TODO(synk): fold the 2x2 pooling window into the following 1x1 conv's in-kernel
    # patch gather so the pooled activation never round-trips HBM.
    if k == 1:
        return x
    B, H, W, C = x.shape
    xr = x.reshape(B, H // k, k, W // k, k, C)
    return jnp.mean(xr, axis=(2, 4), dtype=jnp.float32).astype(x.dtype)


def bottleneck_forward(x, p):
    stride = p['stride']
    out = conv_bn_act(x, p['c1'], relu=True)
    out = conv_bn_act(out, p['c2'], relu=True)
    out = avg_pool(out, stride)
    if 'down' in p:
        identity = conv_bn_act(avg_pool(x, stride), p['down'], relu=False)
    else:
        identity = x
    # conv3 + bn3 + residual add + ReLU fused into a single Pallas matmul epilogue.
    return conv_bn_act(out, p['c3'], relu=True, residual=identity)


def attnpool_forward(x, p, num_heads):
    # x: (B, H, W, C) NHWC bf16  -> (B, output_dim) f32
    B, H, W, C = x.shape
    xf = x.reshape(B, H * W, C).transpose(1, 0, 2).astype(jnp.float32)     # (HW, B, C)
    xf = jnp.concatenate([xf.mean(axis=0, keepdims=True), xf], axis=0)     # (HW+1, B, C)
    xf = xf + p['pos_emb'][:, None, :]
    L = xf.shape[0]

    # Fused Q/K/V projection: one (L*B, C) x (C, 3C) Pallas matmul.
    qkv = matmul_fused(xf.reshape(L * B, C), p['qkv'],
                       relu=False, out_dtype=jnp.float32).reshape(L, B, 3 * C)
    q = qkv[0, :, :C]
    k = qkv[:, :, C:2 * C]
    v = qkv[:, :, 2 * C:]

    hd = C // num_heads
    q = q.reshape(B, num_heads, hd) * (hd ** -0.5)
    k = k.reshape(L, B, num_heads, hd)
    v = v.reshape(L, B, num_heads, hd)
    # TODO(synk): tiny (L = HW+1) single-query attention combine kept in plain JAX.
    scores = jnp.einsum('bhd,lbhd->bhl', q, k)
    attn = jax.nn.softmax(scores, axis=-1)
    ctx = jnp.einsum('bhl,lbhd->bhd', attn, v).reshape(B, C)

    return matmul_fused(ctx, p['c'], relu=False, out_dtype=jnp.float32)


def modified_resnet_forward(x_nchw, prep, heads):
    x = jnp.transpose(x_nchw, (0, 2, 3, 1)).astype(jnp.bfloat16)   # NCHW -> NHWC bf16
    s1, s2, s3 = prep['stem']
    x = conv_bn_act(x, s1)
    x = conv_bn_act(x, s2)
    x = conv_bn_act(x, s3)
    x = avg_pool(x, 2)
    for layer in prep['layers']:
        for blk in layer:
            x = bottleneck_forward(x, blk)
    return attnpool_forward(x, prep['attnpool'], heads)


# ----------------------------------------------------------------------------
# One-time parameter preparation: reshape / pad / cast weights for the kernel
# ----------------------------------------------------------------------------
def _prep_conv(w, scale, bias, stride=1, pad=0):
    KH, KW, Cin, Cout = w.shape
    if KH == 1 and KW == 1:
        wm = w.reshape(Cin, Cout)
    else:
        # (cin, kh, kw) row ordering matches lax.conv_general_dilated_patches channels.
        wm = jnp.transpose(w, (2, 0, 1, 3)).reshape(Cin * KH * KW, Cout)
    K, N = wm.shape
    Np = _round_up(N, 128)
    wm = jnp.pad(wm.astype(jnp.float32), ((0, 0), (0, Np - N))).astype(jnp.bfloat16)
    s = jnp.pad(scale.astype(jnp.float32), (0, Np - N)).reshape(1, Np)
    b = jnp.pad(bias.astype(jnp.float32), (0, Np - N)).reshape(1, Np)
    return {'w': wm, 's': s, 'b': b, 'n': N,
            'ksize': (KH, KW), 'stride': stride, 'pad': pad}


def _prep_linear(w, bias):
    K, N = w.shape
    Np = _round_up(N, 128)
    wp = jnp.pad(w.astype(jnp.float32), ((0, 0), (0, Np - N))).astype(jnp.bfloat16)
    s = jnp.pad(jnp.ones((N,), jnp.float32), (0, Np - N)).reshape(1, Np)
    b = jnp.pad(bias.astype(jnp.float32), (0, Np - N)).reshape(1, Np)
    return {'w': wp, 's': s, 'b': b, 'n': N}


def prepare_params(params):
    st = params['stem']
    stem = [
        _prep_conv(st['conv1_w'], st['bn1_s'], st['bn1_b'], stride=2, pad=1),
        _prep_conv(st['conv2_w'], st['bn2_s'], st['bn2_b'], stride=1, pad=1),
        _prep_conv(st['conv3_w'], st['bn3_s'], st['bn3_b'], stride=1, pad=1),
    ]
    layers = []
    for layer in params['layers']:
        blks = []
        for p in layer:
            bp = {
                'stride': p['stride'],
                'c1': _prep_conv(p['conv1_w'], p['bn1_s'], p['bn1_b']),
                'c2': _prep_conv(p['conv2_w'], p['bn2_s'], p['bn2_b'], stride=1, pad=1),
                'c3': _prep_conv(p['conv3_w'], p['bn3_s'], p['bn3_b']),
            }
            if 'down_w' in p:
                bp['down'] = _prep_conv(p['down_w'], p['down_s'], p['down_b'])
            blks.append(bp)
        layers.append(blks)
    a = params['attnpool']
    qkv_w = jnp.concatenate([a['q_w'], a['k_w'], a['v_w']], axis=1)
    qkv_b = jnp.concatenate([a['q_b'], a['k_b'], a['v_b']])
    attn = {
        'pos_emb': a['pos_emb'].astype(jnp.float32),
        'qkv': _prep_linear(qkv_w, qkv_b),
        'c': _prep_linear(a['c_w'], a['c_b']),
    }
    return {'stem': stem, 'layers': layers, 'attnpool': attn}


# ----------------------------------------------------------------------------
# Deterministic synthetic parameters (PyTorch-like raw layout)
# ----------------------------------------------------------------------------
def init_params(key, layers, output_dim, heads, input_resolution, width):
    keys = iter(jax.random.split(key, 256))

    def nk():
        return next(keys)

    def conv_w(kh, kw, cin, cout):
        return jax.random.normal(nk(), (kh, kw, cin, cout), jnp.float32) / math.sqrt(kh * kw * cin)

    def bn_fold(c):
        # BatchNorm realised in eval mode (running stats folded into an affine).
        gamma = 1.0 + 0.1 * jax.random.normal(nk(), (c,), jnp.float32)
        beta = 0.1 * jax.random.normal(nk(), (c,), jnp.float32)
        mean = 0.1 * jax.random.normal(nk(), (c,), jnp.float32)
        var = jax.random.uniform(nk(), (c,), jnp.float32, 0.5, 1.5)
        scale = gamma / jnp.sqrt(var + 1e-5)
        bias = beta - mean * scale
        return scale, bias

    stem = {}
    stem['conv1_w'] = conv_w(3, 3, 3, width // 2)
    stem['bn1_s'], stem['bn1_b'] = bn_fold(width // 2)
    stem['conv2_w'] = conv_w(3, 3, width // 2, width // 2)
    stem['bn2_s'], stem['bn2_b'] = bn_fold(width // 2)
    stem['conv3_w'] = conv_w(3, 3, width // 2, width)
    stem['bn3_s'], stem['bn3_b'] = bn_fold(width)

    def bottleneck_params(inplanes, planes, stride):
        p = {'stride': stride}
        p['conv1_w'] = conv_w(1, 1, inplanes, planes)
        p['bn1_s'], p['bn1_b'] = bn_fold(planes)
        p['conv2_w'] = conv_w(3, 3, planes, planes)
        p['bn2_s'], p['bn2_b'] = bn_fold(planes)
        p['conv3_w'] = conv_w(1, 1, planes, planes * 4)
        p['bn3_s'], p['bn3_b'] = bn_fold(planes * 4)
        if stride > 1 or inplanes != planes * 4:
            p['down_w'] = conv_w(1, 1, inplanes, planes * 4)
            p['down_s'], p['down_b'] = bn_fold(planes * 4)
        return p

    inplanes = width
    layer_params = []
    for planes, blocks, stride in zip(
            (width, width * 2, width * 4, width * 8), layers, (1, 2, 2, 2)):
        blks = [bottleneck_params(inplanes, planes, stride)]
        inplanes = planes * 4
        for _ in range(1, blocks):
            blks.append(bottleneck_params(inplanes, planes, 1))
        layer_params.append(blks)

    embed_dim = width * 32
    sd = input_resolution // 32
    attn = {}
    attn['pos_emb'] = (jax.random.normal(nk(), (sd * sd + 1, embed_dim), jnp.float32)
                       / math.sqrt(embed_dim))

    def lin(cin, cout):
        w = jax.random.normal(nk(), (cin, cout), jnp.float32) / math.sqrt(cin)
        b = 0.1 * jax.random.normal(nk(), (cout,), jnp.float32)
        return w, b

    attn['q_w'], attn['q_b'] = lin(embed_dim, embed_dim)
    attn['k_w'], attn['k_b'] = lin(embed_dim, embed_dim)
    attn['v_w'], attn['v_b'] = lin(embed_dim, embed_dim)
    attn['c_w'], attn['c_b'] = lin(embed_dim, output_dim)

    return {'stem': stem, 'layers': layer_params, 'attnpool': attn}


# ----------------------------------------------------------------------------
# Correctness guard for the patch / weight feature ordering (flagged concern)
# ----------------------------------------------------------------------------
def _check_patch_conv_ordering(key):
    xk, wk = jax.random.split(key)
    x = jax.random.normal(xk, (1, 8, 8, 3), jnp.float32)
    w = jax.random.normal(wk, (3, 3, 3, 4), jnp.float32) / math.sqrt(27.0)
    cp = _prep_conv(w, jnp.ones((4,), jnp.float32), jnp.zeros((4,), jnp.float32),
                    stride=2, pad=1)
    got = conv_bn_act(x.astype(jnp.bfloat16), cp, relu=False, out_dtype=jnp.float32)
    ref = lax.conv_general_dilated(
        x.astype(jnp.bfloat16).astype(jnp.float32),
        w.astype(jnp.bfloat16).astype(jnp.float32),
        window_strides=(2, 2), padding=((1, 1), (1, 1)),
        dimension_numbers=("NHWC", "HWIO", "NHWC"))
    err = float(jnp.max(jnp.abs(got - ref)))
    assert err < 5e-2, f"patch/weight feature ordering mismatch (max err {err})"


# ----------------------------------------------------------------------------
if __name__ == "__main__":
    key = jax.random.PRNGKey(0)
    pkey, xkey, ckey = jax.random.split(key, 3)

    _check_patch_conv_ordering(ckey)

    # small-but-consistent config: ModifiedResNet(layers=(1,1,1,1), output_dim=32,
    # heads=4, input_resolution=32, width=4)  -> embed_dim = 128, final spatial 1x1.
    layers = (1, 1, 1, 1)
    output_dim = 32
    heads = 4
    input_resolution = 32
    width = 4

    raw_params = init_params(pkey, layers, output_dim, heads, input_resolution, width)
    prep = prepare_params(raw_params)   # pre-pad / pre-cast weights once
    x = jax.random.normal(xkey, (2, 3, input_resolution, input_resolution), jnp.float32)

    fwd = jax.jit(lambda inp: modified_resnet_forward(inp, prep, heads))
    out = jax.block_until_ready(fwd(x))
    assert out.shape == (2, output_dim)
    assert bool(jnp.all(jnp.isfinite(out)))
    print("KERNEL_OK")
</pallas_src>

<mosaic_0001>
module attributes {stable_mosaic.version = 11 : i64} {
  func.func @_mm_kernel(%arg0: i32, %arg1: i32, %arg2: memref<16x27xbf16, #tpu.memory_space<vmem>>, %arg3: memref<27x128xbf16, #tpu.memory_space<vmem>>, %arg4: memref<1x128xf32, #tpu.memory_space<vmem>>, %arg5: memref<1x128xf32, #tpu.memory_space<vmem>>, %arg6: memref<16x128xf32, #tpu.memory_space<vmem>>) attributes {dimension_semantics = [#tpu.dimension_semantics<parallel>, #tpu.dimension_semantics<parallel>], iteration_bounds = array<i64: 1, 1>, scalar_prefetch = 0 : i64, scratch_operands = 0 : i64, tpu.core_type = #tpu.core_type<tc>, window_params = [{transform_indices = @transform_0, window_bounds = array<i64: 16, 27>}, {transform_indices = @transform_1, window_bounds = array<i64: 27, 128>}, {transform_indices = @transform_2, window_bounds = array<i64: 1, 128>}, {transform_indices = @transform_3, window_bounds = array<i64: 1, 128>}, {transform_indices = @transform_4, window_bounds = array<i64: 16, 128>}]} {
    %c0 = arith.constant 0 : index
    %c0_0 = arith.constant 0 : index
    %0 = vector.load %arg2[%c0, %c0_0] : memref<16x27xbf16, #tpu.memory_space<vmem>>, vector<16x27xbf16>
    %c0_1 = arith.constant 0 : index
    %c0_2 = arith.constant 0 : index
    %1 = vector.load %arg3[%c0_1, %c0_2] : memref<27x128xbf16, #tpu.memory_space<vmem>>, vector<27x128xbf16>
    %cst = arith.constant dense<0.000000e+00> : vector<16x128xf32>
    %2 = tpu.matmul %0, %1, %cst {dimension_numbers = #tpu.dot_dimension_numbers<[1], [0], [0], [1], [0, 0, 1, 1], [], []>} : vector<16x27xbf16>, vector<27x128xbf16>, vector<16x128xf32> -> vector<16x128xf32>
    %c0_3 = arith.constant 0 : index
    %c0_4 = arith.constant 0 : index
    %3 = vector.load %arg4[%c0_3, %c0_4] : memref<1x128xf32, #tpu.memory_space<vmem>>, vector<1x128xf32>
    %4 = vector.broadcast %3 : vector<1x128xf32> to vector<16x128xf32>
    %5 = arith.mulf %2, %4 : vector<16x128xf32>
    %c0_5 = arith.constant 0 : index
    %c0_6 = arith.constant 0 : index
    %6 = vector.load %arg5[%c0_5, %c0_6] : memref<1x128xf32, #tpu.memory_space<vmem>>, vector<1x128xf32>
    %7 = vector.broadcast %6 : vector<1x128xf32> to vector<16x128xf32>
    %8 = arith.addf %5, %7 : vector<16x128xf32>
    %c0_7 = arith.constant 0 : index
    %c0_8 = arith.constant 0 : index
    %9 = vector.load %arg6[%c0_7, %c0_8] : memref<16x128xf32, #tpu.memory_space<vmem>>, vector<16x128xf32>
    tpu.vector_store %arg6[%c0_7, %c0_8], %8 {strides = array<i32>} : memref<16x128xf32, #tpu.memory_space<vmem>>, vector<16x128xf32>,
    return
  }
  func.func @transform_0(%arg0: i32, %arg1: i32) -> (i32, i32) {
    %c0_i32 = arith.constant 0 : i32
    %c0_i32_0 = arith.constant 0 : i32
    return %arg1, %c0_i32 : i32, i32
  }
  func.func @transform_1(%arg0: i32, %arg1: i32) -> (i32, i32) {
    %c0_i32 = arith.constant 0 : i32
    %c0_i32_0 = arith.constant 0 : i32
    return %c0_i32, %arg0 : i32, i32
  }
  func.func @transform_2(%arg0: i32, %arg1: i32) -> (i32, i32) {
    %c0_i32 = arith.constant 0 : i32
    %c0_i32_0 = arith.constant 0 : i32
    return %c0_i32, %arg0 : i32, i32
  }
  func.func @transform_3(%arg0: i32, %arg1: i32) -> (i32, i32) {
    %c0_i32 = arith.constant 0 : i32
    %c0_i32_0 = arith.constant 0 : i32
    return %c0_i32, %arg0 : i32, i32
  }
  func.func @transform_4(%arg0: i32, %arg1: i32) -> (i32, i32) {
    %c0_i32 = arith.constant 0 : i32
    return %arg1, %arg0 : i32, i32
  }
}

</mosaic_0001>

<bundles_post_ra>
// kernel: tpu_custom_call.1
= control target key start
LH: loop header
LB: loop body
LE: loop exit
PB: predicated region body
PF: predicated region fallthrough
CT: control target
= control target key end

     0   :  { %9 = vsyncpa [#allocation3], 0  ;;  %s338_s0 = inlined_call_operand.hbm [shape: bf16[16,27], index: 0, kind: input, shape index: {}]   ;;  %s339_s1 = inlined_call_operand.hbm [shape: bf16[27,128], index: 1, kind: input, shape index: {}]   ;;  %s340_s2 = inlined_call_operand.vmem [shape: f32[1,128], index: 2, kind: input, shape index: {}]   ;;  %s341_s3 = inlined_call_operand.vmem [shape: f32[1,128], index: 3, kind: input, shape index: {}]   ;;  %s342_s4 = inlined_call_operand.hbm [shape: f32[16,128], index: 4, kind: output, shape index: {}]  }
   0x1   :  { %10 = vsyncpa [#allocation6], 0 }
   0x2   :  { %11 = vsyncpa [#allocation4], 0  ;;  %s261_s15 = smov [#allocation2]   ;;  %s189_s19 = scalar_lea.hbm %s338_s0, 128 }
   0x3   :  { %s17_s16 = sshll.u32 %s261_s15, 4  ;;  %p190_p0 = scmp.ne.s32.totalorder %s338_s0, %s189_s19  ;;  %s18_s16 = int_to_ptr.vmem [resolvable:$true] %s17_s16 }
   0x4   :  { %p193_p1 = scmp.lt.u32.totalorder %s189_s19, %s338_s0 }
   0x6   :  { %p195_p2 = pnand %p193_p1, %p190_p0 }
   0x8   :  { %198 = shalt.err (!%p195_p2)
}
   0x9   :  { %s199_s24 = scalar_lea.vmem %s18_s16, 128  ;;  %p204_p4 = scmp.lt.s32.totalorder %s18_s16, %s18_s16 }
   0xa   :  { %p200_p3 = scmp.ne.s32.totalorder %s18_s16, %s199_s24  ;;  %p205_p5 = scmp.lt.s32.totalorder %s199_s24, %s199_s24 }
   0xc   :  { %p206_p6 = por %p205_p5, %p204_p4 }
   0xe   :  { %p207_p7 = pnand %p206_p6, %p200_p3 }
  0x10   :  { %210 = shalt.err (!%p207_p7)
}
  0x11   :  { %s262_s25 = smov 64   ;;  %s263_s26 = smov 4  }
  0x12   :  { %23 = dma.hbm_to_vmem [thread:$0]  %s338_s0, 128, %s18_s16, [#allocation3], %s262_s25, %s262_s25, %s263_s26  }
  0x13   :  { %s264_s29 = smov [#allocation5]   ;;  %s211_s7 = scalar_lea.hbm %s339_s1, 256 }
  0x14   :  { %s29_s30 = sshll.u32 %s264_s29, 4  ;;  %p212_p8 = scmp.ne.s32.totalorder %s339_s1, %s211_s7  ;;  %s30_s30 = int_to_ptr.vmem [resolvable:$true] %s29_s30 }
  0x15   :  { %p215_p9 = scmp.lt.u32.totalorder %s211_s7, %s339_s1 }
  0x17   :  { %p217_p10 = pnand %p215_p9, %p212_p8 }
  0x19   :  { %220 = shalt.err (!%p217_p10)
}
  0x1a   :  { %s221_s12 = scalar_lea.vmem %s30_s30, 256  ;;  %p226_p12 = scmp.lt.s32.totalorder %s30_s30, %s30_s30 }
  0x1b   :  { %p222_p11 = scmp.ne.s32.totalorder %s30_s30, %s221_s12  ;;  %p227_p13 = scmp.lt.s32.totalorder %s221_s12, %s221_s12 }
  0x1d   :  { %p228_p0 = por %p227_p13, %p226_p12 }
  0x1f   :  { %p229_p1 = pnand %p228_p0, %p222_p11 }
  0x21   :  { %232 = shalt.err (!%p229_p1)
}
  0x22   :  { %35 = dma.hbm_to_vmem [thread:$0]  %s339_s1, 256, %s30_s30, [#allocation6], %s262_s25, %s262_s25, %s263_s26  }
  0x23   :  { %255 = dma.done.wait [#allocation3], 128  }
  0x24   :  { %256 = vsyncadd [#allocation3], 4294967168 }
  0x25   :  { %257 = dma.done.wait [#allocation6], 256  }
  0x26   :  { %258 = vsyncadd [#allocation6], 4294967040  ;;  %v265_v0 = vmov 0.0   ;;  %vm73_vm0 = vcmask 1044480   ;;  %vm266_vm1 = vmmov 0   ;;  %vm74_vm2 = vcmask 1045504  }
  0x27   :  { %168 = vmatprep.subr.bf16.mxu0 %v265_v0  ;;  %172 = vmatprep.mubr.msk.bf16.mxu0 %vm266_vm1, %v265_v0  ;;  %v267_v1 = vmov 65535   ;;  %v186_v3 = vld [vmem:[#allocation5] sm:$0xff]   ;;  %v187_v5 = vld [vmem:[#allocation5 + $0x8] sm:$0x3f]   ;;  %v188_v7 = vld [vmem:[#allocation2] sm:$0xff]   ;;  %vm69_vm3 = vcmask 220160  }
  0x28   :  { %v75_v2 = vsel %vm73_vm0, 4294967295, %v267_v1  ;;  %169 = vmatpush3.bf16.msra.mxu0 %v186_v3  ;;  %v163_v8 = vld [vmem:[%s340_s2] ss:$0 sm:$0xff]  ;;  %s268_s17 = smov [#allocation7]  }
  0x29   :  { %v76_v4 = vsel %vm74_vm2, %v75_v2, 0  ;;  %170 = vmatprep.subr.bf16.mxu0 %v265_v0  ;;  %v164_v10 = vld [vmem:[%s341_s3] ss:$0 sm:$0xff]  ;;  %s146_s18 = sshll.u32 %s268_s17, 4  ;;  %s147_s18 = int_to_ptr.vmem [resolvable:$true] %s146_s18 }
  0x2a   :  { %v78_v6 = vand.u32 %v187_v5, %v76_v4  ;;  %s233_s19 = scalar_lea.vmem %s147_s18, 256  ;;  %p238_p3 = scmp.lt.s32.totalorder %s147_s18, %s147_s18 }
  0x2b   :  { %p234_p2 = scmp.ne.s32.totalorder %s147_s18, %s233_s19  ;;  %p239_p4 = scmp.lt.s32.totalorder %s233_s19, %s233_s19 }
  0x2c   :  { %171 = vmatpush3.bf16.msra.mxu0 %v78_v6 }
  0x2d   :  { %p240_p5 = por %p239_p4, %p238_p3 }
  0x2f   :  { %173 = vmatmul.mubr.msk.bf16.vlgmr.msra.gmra.mrb[0].mxu0 %vm69_vm3, %v188_v7  ;;  %p241_p6 = pnand %p240_p5, %p234_p2 }
 0x102   :  { %v114_v9 = vpop.f32.mrb[0].mxu0 }
 0x103   :  { %v128_v11 = vmul.f32 %v163_v8, %v114_v9  ;;  %v174_v12 = vpop.f32.mrb[1].mxu0 }
 0x104   :  { %v117_v13 = vpop.f32.mrb[2].mxu0 }
 0x105   :  { %v137_v14 = vadd.f32 %v164_v10, %v128_v11  ;;  %v129_v15 = vmul.f32 %v163_v8, %v117_v13  ;;  %v175_v16 = vpop.f32.mrb[3].mxu0 }
 0x107   :  { %139 = vst [vmem:[#allocation7] sm:$0xff] %v137_v14  ;;  %v138_v17 = vadd.f32 %v164_v10, %v129_v15 }
 0x109   :  { %140 = vst [vmem:[#allocation7 + $0x8] sm:$0xff] %v138_v17 }
 0x10a   :  { %244 = shalt.err (!%p241_p6)
}
 0x10b   :  { %s245_s20 = scalar_lea.hbm %s342_s4, 256 }
 0x10c   :  { %p246_p7 = scmp.ne.s32.totalorder %s342_s4, %s245_s20  ;;  %p249_p8 = scmp.lt.u32.totalorder %s245_s20, %s342_s4 }
 0x10e   :  { %p251_p9 = pnand %p249_p8, %p246_p7 }
 0x110   :  { %254 = shalt.err (!%p251_p9)
}
 0x111   :  { %s269_s25 = smov 128   ;;  %s270_s26 = smov 8  }
 0x112   :  { %152 = dma.vmem_to_hbm [thread:$0]  %s147_s18, 256, %s342_s4, [#allocation4], %s269_s25, %s269_s25, %s270_s26  }
 0x113   :  { %259 = dma.done.wait [#allocation4], 256  }
 0x114   :  { %260 = vsyncadd [#allocation4], 4294967040 }
 0x115   :  { %156 = vsyncpa [#allocation3], 1 }
 0x116   :  { %157 = vsyncpa [#allocation6], 1 }
 0x117   :  { %158 = vsyncpa [#allocation4], 1 }

</bundles_post_ra>
